<compile_context>
chip_gen: v7x
topology: tpu7x:2x2x1
jax: 0.10.0
libtpu: 0.0.40
codegen_flags: <defaults>
</compile_context>

<pallas_src>
import functools
import math

import jax
import jax.numpy as jnp
from jax import lax
from jax.experimental import pallas as pl
from jax.experimental.pallas import tpu as pltpu


def _gelu_tanh(x):
    # TODO(synk): PyTorch nn.GELU default is exact (erf); tanh approximation used here.
    c = math.sqrt(2.0 / math.pi)
    return 0.5 * x * (1.0 + jnp.tanh(c * (x + 0.044715 * x * x * x)))


def _layer_norm(x, gamma, beta, eps=1e-5):
    mu = jnp.mean(x, axis=-1, keepdims=True)
    xc = x - mu
    var = jnp.mean(xc * xc, axis=-1, keepdims=True)
    return xc * lax.rsqrt(var + eps) * gamma + beta


def _decoder_block_kernel(x_ref, ln1_g_ref, ln1_b_ref, ln3_g_ref, ln3_b_ref,
                          wqkv_ref, bqkv_ref, wo_ref, bo_ref,
                          w1_ref, b1_ref, w2_ref, b2_ref, out_ref,
                          *, nheads, d_k, scale, is_causal, compute_dtype):
    f32 = jnp.float32
    x = x_ref[0].astype(f32)                                        # (S, D)
    S, D = x.shape

    # ---------------- LayerNorm 1 ----------------
    xn = _layer_norm(x, ln1_g_ref[0], ln1_b_ref[0])

    # -------- fused, head-batched QKV projection (one MXU sequence, K=D) --------
    xh = jnp.broadcast_to(xn.astype(compute_dtype)[None], (nheads, S, D))
    qkv = jnp.einsum('hsd,hdk->hsk', xh, wqkv_ref[...],
                     preferred_element_type=f32)                    # (H, S, 3*d_k)
    qkv = qkv + bqkv_ref[...]                                       # qkv_bias=True
    q = qkv[:, :, :d_k] * scale                                     # scale folded into q
    k = qkv[:, :, d_k:2 * d_k]
    v = qkv[:, :, 2 * d_k:]

    # ---------------- attention, all heads batched ----------------
    s = jnp.einsum('hqd,hkd->hqk', q.astype(compute_dtype), k.astype(compute_dtype),
                   preferred_element_type=f32)                      # (H, S, S)
    if is_causal:
        qi = lax.broadcasted_iota(jnp.int32, (S, S), 0)
        ki = lax.broadcasted_iota(jnp.int32, (S, S), 1)
        s = jnp.where((ki <= qi)[None, :, :], s, jnp.float32(-1e10))

    s = s - jnp.max(s, axis=-1, keepdims=True)
    p = jnp.exp(s)
    p = p * pl.reciprocal(jnp.sum(p, axis=-1, keepdims=True), approx=True)

    ctx = jnp.einsum('hqk,hkd->hqd', p.astype(compute_dtype), v.astype(compute_dtype),
                     preferred_element_type=f32)                    # (H, S, d_k)

    # -------- merge heads -> single K=D output projection (+ bias once) --------
    ctx2d = jnp.concatenate([ctx[h] for h in range(nheads)], axis=-1)   # (S, D)
    attn = jnp.dot(ctx2d.astype(compute_dtype), wo_ref[...],
                   preferred_element_type=f32) + bo_ref[0]

    # ---------------- residual 1 ----------------
    y = x + attn

    # ---------------- LayerNorm 3 + FeedForward ----------------
    yn = _layer_norm(y, ln3_g_ref[0], ln3_b_ref[0])
    h = jnp.dot(yn.astype(compute_dtype), w1_ref[...],
                preferred_element_type=f32) + b1_ref[0]
    h = _gelu_tanh(h)
    ffn = jnp.dot(h.astype(compute_dtype), w2_ref[...],
                  preferred_element_type=f32) + b2_ref[0]

    out_ref[0] = (y + ffn).astype(out_ref.dtype)


def decoder_block_forward(tgt, params, *, nheads, is_causal=True,
                          compute_dtype=jnp.float32):
    """Pallas DecoderBlock forward. Returns (out, new_cache=None, scores=None)."""
    # TODO(synk): use_cache/kv_cache, key_padding_mask (tgt_mask), cross-attention
    # and return_scores=True paths are not implemented in the kernel.
    B, S, D = tgt.shape
    assert D % nheads == 0
    d_k = D // nheads
    scale = 1.0 / math.sqrt(d_k)
    hid = params['w1'].shape[1]
    f32 = jnp.float32

    # ---- pack weights for the kernel (cheap one-time XLA ops in the wrapper) ----
    def heads_last(w):                         # (D, D)[in,out] -> (H, D, d_k)
        return w.reshape(D, nheads, d_k).transpose(1, 0, 2)

    def heads_last_b(b):                       # (1, D) -> (H, 1, d_k)
        return b.reshape(nheads, 1, d_k)

    wqkv = jnp.concatenate([heads_last(params['wq']), heads_last(params['wk']),
                            heads_last(params['wv'])], axis=-1)       # (H, D, 3*d_k)
    bqkv = jnp.concatenate([heads_last_b(params['bq']), heads_last_b(params['bk']),
                            heads_last_b(params['bv'])], axis=-1)     # (H, 1, 3*d_k)

    cdt = compute_dtype
    wqkv = wqkv.astype(cdt)
    wo = params['wo'].astype(cdt)
    w1 = params['w1'].astype(cdt)
    w2 = params['w2'].astype(cdt)

    kernel = functools.partial(_decoder_block_kernel, nheads=nheads, d_k=d_k,
                               scale=scale, is_causal=is_causal, compute_dtype=cdt)

    const2d = lambda shape: pl.BlockSpec(shape, lambda b: (0, 0))
    const3d = lambda shape: pl.BlockSpec(shape, lambda b: (0, 0, 0))

    out = pl.pallas_call(
        kernel,
        out_shape=jax.ShapeDtypeStruct((B, S, D), f32),
        grid=(B,),
        in_specs=[
            pl.BlockSpec((1, S, D), lambda b: (b, 0, 0)),    # tgt
            const2d((1, D)), const2d((1, D)),                # LN1 gamma / beta
            const2d((1, D)), const2d((1, D)),                # LN3 gamma / beta
            const3d((nheads, D, 3 * d_k)),                   # fused per-head QKV weight
            const3d((nheads, 1, 3 * d_k)),                   # fused per-head QKV bias
            const2d((D, D)),                                 # Wo
            const2d((1, D)),                                 # bo
            const2d((D, hid)),                               # fc1 W
            const2d((1, hid)),                               # fc1 b
            const2d((hid, D)),                               # fc2 W
            const2d((1, D)),                                 # fc2 b
        ],
        out_specs=pl.BlockSpec((1, S, D), lambda b: (b, 0, 0)),
        compiler_params=pltpu.CompilerParams(
            dimension_semantics=("parallel",)),
    )(tgt.astype(f32),
      params['ln1_g'], params['ln1_b'], params['ln3_g'], params['ln3_b'],
      wqkv, bqkv, wo, params['bo'], w1, params['b1'], w2, params['b2'])

    return out, None, None


def _reference(tgt, params, *, nheads, is_causal=True):
    """Pure-JAX reference mirroring the PyTorch DecoderBlock forward (default path)."""
    B, S, D = tgt.shape
    d_k = D // nheads
    scale = 1.0 / math.sqrt(d_k)

    def ln(x, g, b, eps=1e-5):
        mu = x.mean(-1, keepdims=True)
        var = ((x - mu) ** 2).mean(-1, keepdims=True)
        return (x - mu) / jnp.sqrt(var + eps) * g + b

    xn = ln(tgt, params['ln1_g'], params['ln1_b'])
    q = xn @ params['wq'] + params['bq']
    k = xn @ params['wk'] + params['bk']
    v = xn @ params['wv'] + params['bv']
    q = q.reshape(B, S, nheads, d_k)
    k = k.reshape(B, S, nheads, d_k)
    v = v.reshape(B, S, nheads, d_k)
    s = jnp.einsum('nqhd,nkhd->nhqk', q, k) * scale
    if is_causal:
        mask = jnp.tril(jnp.ones((S, S), dtype=bool))[None, None]
        s = jnp.where(mask, s, -1e10)
    p = jax.nn.softmax(s, axis=-1)
    ctx = jnp.einsum('nhql,nlhd->nqhd', p, v).reshape(B, S, D)
    attn = ctx @ params['wo'] + params['bo']
    y = tgt + attn
    yn = ln(y, params['ln3_g'], params['ln3_b'])
    h = _gelu_tanh(yn @ params['w1'] + params['b1'])
    return y + (h @ params['w2'] + params['b2'])


if __name__ == "__main__":
    B, S, D, H, HID = 2, 8, 32, 8, 64      # bs=2, seq=8, d_model=32, heads=8, mlp=64

    key = jax.random.PRNGKey(0)
    ks = jax.random.split(key, 17)
    r = lambda k, shape, s=0.1: jax.random.normal(k, shape, dtype=jnp.float32) * s

    tgt = jax.random.normal(ks[0], (B, S, D), dtype=jnp.float32)
    params = dict(
        ln1_g=1.0 + r(ks[1], (1, D)), ln1_b=r(ks[2], (1, D)),
        ln3_g=1.0 + r(ks[3], (1, D)), ln3_b=r(ks[4], (1, D)),
        wq=r(ks[5], (D, D)), wk=r(ks[6], (D, D)), wv=r(ks[7], (D, D)),
        bq=r(ks[8], (1, D)), bk=r(ks[9], (1, D)), bv=r(ks[10], (1, D)),
        wo=r(ks[11], (D, D)), bo=r(ks[12], (1, D)),
        w1=r(ks[13], (D, HID)), b1=r(ks[14], (1, HID)),
        w2=r(ks[15], (HID, D)), b2=r(ks[16], (1, D)),
    )

    ref = _reference(tgt, params, nheads=H, is_causal=True)

    # f32 MXU path. Tolerance allows for approx-reciprocal softmax normalization
    # and op reordering (scale folded into q).
    out, cache, scores = decoder_block_forward(tgt, params, nheads=H, is_causal=True,
                                               compute_dtype=jnp.float32)
    out = jax.block_until_ready(out)
    assert out.shape == (B, S, D)
    assert cache is None and scores is None
    assert jnp.allclose(out, ref, atol=2e-2, rtol=2e-2), \
        f"f32 path mismatch: max abs err {jnp.max(jnp.abs(out - ref))}"

    # bf16 MXU path (f32 accumulation) — perf-review item; looser tolerance.
    out_bf16, _, _ = decoder_block_forward(tgt, params, nheads=H, is_causal=True,
                                           compute_dtype=jnp.bfloat16)
    out_bf16 = jax.block_until_ready(out_bf16)
    assert jnp.allclose(out_bf16, ref, atol=6e-2, rtol=6e-2), \
        f"bf16 path mismatch: max abs err {jnp.max(jnp.abs(out_bf16 - ref))}"

    print("KERNEL_OK")
</pallas_src>

<mosaic_0001>
module attributes {stable_mosaic.version = 11 : i64} {
  func.func @_decoder_block_kernel(%arg0: i32, %arg1: memref<1x8x32xf32, #tpu.memory_space<vmem>>, %arg2: memref<1x32xf32, #tpu.memory_space<vmem>>, %arg3: memref<1x32xf32, #tpu.memory_space<vmem>>, %arg4: memref<1x32xf32, #tpu.memory_space<vmem>>, %arg5: memref<1x32xf32, #tpu.memory_space<vmem>>, %arg6: memref<8x32x12xf32, #tpu.memory_space<vmem>>, %arg7: memref<8x1x12xf32, #tpu.memory_space<vmem>>, %arg8: memref<32x32xf32, #tpu.memory_space<vmem>>, %arg9: memref<1x32xf32, #tpu.memory_space<vmem>>, %arg10: memref<32x64xf32, #tpu.memory_space<vmem>>, %arg11: memref<1x64xf32, #tpu.memory_space<vmem>>, %arg12: memref<64x32xf32, #tpu.memory_space<vmem>>, %arg13: memref<1x32xf32, #tpu.memory_space<vmem>>, %arg14: memref<1x8x32xf32, #tpu.memory_space<vmem>>) attributes {dimension_semantics = [#tpu.dimension_semantics<parallel>], iteration_bounds = array<i64: 2>, scalar_prefetch = 0 : i64, scratch_operands = 0 : i64, tpu.core_type = #tpu.core_type<tc>, window_params = [{transform_indices = @transform_0, window_bounds = array<i64: 1, 8, 32>}, {pipeline_mode = #tpu.pipeline_mode<synchronous>, transform_indices = @transform_1, window_bounds = array<i64: 1, 32>}, {pipeline_mode = #tpu.pipeline_mode<synchronous>, transform_indices = @transform_2, window_bounds = array<i64: 1, 32>}, {pipeline_mode = #tpu.pipeline_mode<synchronous>, transform_indices = @transform_3, window_bounds = array<i64: 1, 32>}, {pipeline_mode = #tpu.pipeline_mode<synchronous>, transform_indices = @transform_4, window_bounds = array<i64: 1, 32>}, {pipeline_mode = #tpu.pipeline_mode<synchronous>, transform_indices = @transform_5, window_bounds = array<i64: 8, 32, 12>}, {pipeline_mode = #tpu.pipeline_mode<synchronous>, transform_indices = @transform_6, window_bounds = array<i64: 8, 1, 12>}, {pipeline_mode = #tpu.pipeline_mode<synchronous>, transform_indices = @transform_7, window_bounds = array<i64: 32, 32>}, {pipeline_mode = #tpu.pipeline_mode<synchronous>, transform_indices = @transform_8, window_bounds = array<i64: 1, 32>}, {pipeline_mode = #tpu.pipeline_mode<synchronous>, transform_indices = @transform_9, window_bounds = array<i64: 32, 64>}, {pipeline_mode = #tpu.pipeline_mode<synchronous>, transform_indices = @transform_10, window_bounds = array<i64: 1, 64>}, {pipeline_mode = #tpu.pipeline_mode<synchronous>, transform_indices = @transform_11, window_bounds = array<i64: 64, 32>}, {pipeline_mode = #tpu.pipeline_mode<synchronous>, transform_indices = @transform_12, window_bounds = array<i64: 1, 32>}, {transform_indices = @transform_13, window_bounds = array<i64: 1, 8, 32>}]} {
    %c0 = arith.constant 0 : index
    %c0_0 = arith.constant 0 : index
    %c0_1 = arith.constant 0 : index
    %0 = vector.load %arg1[%c0, %c0_0, %c0_1] : memref<1x8x32xf32, #tpu.memory_space<vmem>>, vector<1x8x32xf32>
    %1 = vector.shape_cast %0 : vector<1x8x32xf32> to vector<8x32xf32>
    %c0_2 = arith.constant 0 : index
    %c0_3 = arith.constant 0 : index
    %2 = vector.load %arg2[%c0_2, %c0_3] : memref<1x32xf32, #tpu.memory_space<vmem>>, vector<1x32xf32>
    %3 = vector.shape_cast %2 : vector<1x32xf32> to vector<32xf32>
    %c0_4 = arith.constant 0 : index
    %c0_5 = arith.constant 0 : index
    %4 = vector.load %arg3[%c0_4, %c0_5] : memref<1x32xf32, #tpu.memory_space<vmem>>, vector<1x32xf32>
    %5 = vector.shape_cast %4 : vector<1x32xf32> to vector<32xf32>
    %cst = arith.constant dense<0.000000e+00> : vector<8xf32>
    %6 = vector.multi_reduction <add>, %1, %cst [1] : vector<8x32xf32> to vector<8xf32>
    %7 = vector.shape_cast %6 : vector<8xf32> to vector<8x1xf32>
    %cst_6 = arith.constant 3.200000e+01 : f32
    %8 = vector.broadcast %cst_6 : f32 to vector<8x1xf32>
    %9 = arith.divf %7, %8 : vector<8x1xf32>
    %10 = vector.broadcast %9 : vector<8x1xf32> to vector<8x32xf32>
    %11 = arith.subf %1, %10 : vector<8x32xf32>
    %12 = arith.mulf %11, %11 : vector<8x32xf32>
    %cst_7 = arith.constant dense<0.000000e+00> : vector<8xf32>
    %13 = vector.multi_reduction <add>, %12, %cst_7 [1] : vector<8x32xf32> to vector<8xf32>
    %14 = vector.shape_cast %13 : vector<8xf32> to vector<8x1xf32>
    %cst_8 = arith.constant 3.200000e+01 : f32
    %15 = vector.broadcast %cst_8 : f32 to vector<8x1xf32>
    %16 = arith.divf %14, %15 : vector<8x1xf32>
    %cst_9 = arith.constant 9.99999974E-6 : f32
    %17 = vector.broadcast %cst_9 : f32 to vector<8x1xf32>
    %18 = arith.addf %16, %17 : vector<8x1xf32>
    %19 = math.rsqrt %18 : vector<8x1xf32>
    %20 = vector.broadcast %19 : vector<8x1xf32> to vector<8x32xf32>
    %21 = arith.mulf %11, %20 : vector<8x32xf32>
    %22 = vector.shape_cast %3 : vector<32xf32> to vector<1x32xf32>
    %23 = vector.broadcast %22 : vector<1x32xf32> to vector<8x32xf32>
    %24 = arith.mulf %21, %23 : vector<8x32xf32>
    %25 = vector.shape_cast %5 : vector<32xf32> to vector<1x32xf32>
    %26 = vector.broadcast %25 : vector<1x32xf32> to vector<8x32xf32>
    %27 = arith.addf %24, %26 : vector<8x32xf32>
    %28 = vector.shape_cast %27 : vector<8x32xf32> to vector<1x8x32xf32>
    %29 = vector.shape_cast %28 : vector<1x8x32xf32> to vector<1x8x32xf32>
    %30 = vector.broadcast %29 : vector<1x8x32xf32> to vector<8x8x32xf32>
    %c0_10 = arith.constant 0 : index
    %c0_11 = arith.constant 0 : index
    %c0_12 = arith.constant 0 : index
    %31 = vector.load %arg6[%c0_10, %c0_11, %c0_12] : memref<8x32x12xf32, #tpu.memory_space<vmem>>, vector<8x32x12xf32>
    "tpu.trace_start"() <{level = 10 : i32, message = "hsd,hdk->hsk"}> : () -> ()
    %cst_13 = arith.constant dense<0.000000e+00> : vector<8x8x12xf32>
    %32 = tpu.matmul %30, %31, %cst_13 {dimension_numbers = #tpu.dot_dimension_numbers<[2], [1], [1], [2], [0, 0, 0, 1, 1, 2], [0], [0]>} : vector<8x8x32xf32>, vector<8x32x12xf32>, vector<8x8x12xf32> -> vector<8x8x12xf32>
    "tpu.trace_stop"() : () -> ()
    %c0_14 = arith.constant 0 : index
    %c0_15 = arith.constant 0 : index
    %c0_16 = arith.constant 0 : index
    %33 = vector.load %arg7[%c0_14, %c0_15, %c0_16] : memref<8x1x12xf32, #tpu.memory_space<vmem>>, vector<8x1x12xf32>
    %34 = vector.broadcast %33 : vector<8x1x12xf32> to vector<8x8x12xf32>
    %35 = arith.addf %32, %34 : vector<8x8x12xf32>
    %36 = vector.extract_strided_slice %35 {offsets = [0, 0, 0], sizes = [8, 8, 4], strides = [1, 1, 1]} : vector<8x8x12xf32> to vector<8x8x4xf32>
    %cst_17 = arith.constant 5.000000e-01 : f32
    %37 = vector.broadcast %cst_17 : f32 to vector<8x8x4xf32>
    %38 = arith.mulf %36, %37 : vector<8x8x4xf32>
    %39 = vector.extract_strided_slice %35 {offsets = [0, 0, 4], sizes = [8, 8, 4], strides = [1, 1, 1]} : vector<8x8x12xf32> to vector<8x8x4xf32>
    %40 = vector.extract_strided_slice %35 {offsets = [0, 0, 8], sizes = [8, 8, 4], strides = [1, 1, 1]} : vector<8x8x12xf32> to vector<8x8x4xf32>
    "tpu.trace_start"() <{level = 10 : i32, message = "hqd,hkd->hqk"}> : () -> ()
    %cst_18 = arith.constant dense<0.000000e+00> : vector<8x8x8xf32>
    %41 = tpu.matmul %38, %39, %cst_18 {dimension_numbers = #tpu.dot_dimension_numbers<[2], [2], [1], [1], [0, 0, 0, 1, 1, 1], [0], [0]>} : vector<8x8x4xf32>, vector<8x8x4xf32>, vector<8x8x8xf32> -> vector<8x8x8xf32>
    "tpu.trace_stop"() : () -> ()
    %42 = tpu.iota {dimensions = array<i32: 0>} : vector<8x8xi32>
    %43 = tpu.iota {dimensions = array<i32: 1>} : vector<8x8xi32>
    %44 = arith.cmpi sle, %43, %42 : vector<8x8xi32>
    %45 = vector.shape_cast %44 : vector<8x8xi1> to vector<1x8x8xi1>
    %cst_19 = arith.constant -1.000000e+10 : f32
    %46 = vector.shape_cast %45 : vector<1x8x8xi1> to vector<1x8x8xi1>
    %47 = vector.broadcast %46 : vector<1x8x8xi1> to vector<8x8x8xi1>
    %48 = vector.broadcast %cst_19 : f32 to vector<8x8x8xf32>
    %49 = arith.select %47, %41, %48 : vector<8x8x8xi1>, vector<8x8x8xf32>
    %cst_20 = arith.constant dense<0xFF800000> : vector<8x8xf32>
    %50 = vector.multi_reduction <maximumf>, %49, %cst_20 [2] : vector<8x8x8xf32> to vector<8x8xf32>
    %51 = vector.shape_cast %50 : vector<8x8xf32> to vector<8x8x1xf32>
    %52 = vector.broadcast %51 : vector<8x8x1xf32> to vector<8x8x8xf32>
    %53 = arith.subf %49, %52 : vector<8x8x8xf32>
    %54 = math.exp %53 : vector<8x8x8xf32>
    %cst_21 = arith.constant dense<0.000000e+00> : vector<8x8xf32>
    %55 = vector.multi_reduction <add>, %54, %cst_21 [2] : vector<8x8x8xf32> to vector<8x8xf32>
    %56 = vector.shape_cast %55 : vector<8x8xf32> to vector<8x8x1xf32>
    %57 = tpu.reciprocal %56 {approx = true} : vector<8x8x1xf32> -> vector<8x8x1xf32>
    %58 = vector.broadcast %57 : vector<8x8x1xf32> to vector<8x8x8xf32>
    %59 = arith.mulf %54, %58 : vector<8x8x8xf32>
    "tpu.trace_start"() <{level = 10 : i32, message = "hqk,hkd->hqd"}> : () -> ()
    %cst_22 = arith.constant dense<0.000000e+00> : vector<8x8x4xf32>
    %60 = tpu.matmul %59, %40, %cst_22 {dimension_numbers = #tpu.dot_dimension_numbers<[2], [1], [1], [2], [0, 0, 0, 1, 1, 2], [0], [0]>} : vector<8x8x8xf32>, vector<8x8x4xf32>, vector<8x8x4xf32> -> vector<8x8x4xf32>
    "tpu.trace_stop"() : () -> ()
    %61 = vector.extract_strided_slice %60 {offsets = [0, 0, 0], sizes = [1, 8, 4], strides = [1, 1, 1]} : vector<8x8x4xf32> to vector<1x8x4xf32>
    %62 = vector.shape_cast %61 : vector<1x8x4xf32> to vector<8x4xf32>
    %63 = vector.extract_strided_slice %60 {offsets = [1, 0, 0], sizes = [1, 8, 4], strides = [1, 1, 1]} : vector<8x8x4xf32> to vector<1x8x4xf32>
    %64 = vector.shape_cast %63 : vector<1x8x4xf32> to vector<8x4xf32>
    %65 = vector.extract_strided_slice %60 {offsets = [2, 0, 0], sizes = [1, 8, 4], strides = [1, 1, 1]} : vector<8x8x4xf32> to vector<1x8x4xf32>
    %66 = vector.shape_cast %65 : vector<1x8x4xf32> to vector<8x4xf32>
    %67 = vector.extract_strided_slice %60 {offsets = [3, 0, 0], sizes = [1, 8, 4], strides = [1, 1, 1]} : vector<8x8x4xf32> to vector<1x8x4xf32>
    %68 = vector.shape_cast %67 : vector<1x8x4xf32> to vector<8x4xf32>
    %69 = vector.extract_strided_slice %60 {offsets = [4, 0, 0], sizes = [1, 8, 4], strides = [1, 1, 1]} : vector<8x8x4xf32> to vector<1x8x4xf32>
    %70 = vector.shape_cast %69 : vector<1x8x4xf32> to vector<8x4xf32>
    %71 = vector.extract_strided_slice %60 {offsets = [5, 0, 0], sizes = [1, 8, 4], strides = [1, 1, 1]} : vector<8x8x4xf32> to vector<1x8x4xf32>
    %72 = vector.shape_cast %71 : vector<1x8x4xf32> to vector<8x4xf32>
    %73 = vector.extract_strided_slice %60 {offsets = [6, 0, 0], sizes = [1, 8, 4], strides = [1, 1, 1]} : vector<8x8x4xf32> to vector<1x8x4xf32>
    %74 = vector.shape_cast %73 : vector<1x8x4xf32> to vector<8x4xf32>
    %75 = vector.extract_strided_slice %60 {offsets = [7, 0, 0], sizes = [1, 8, 4], strides = [1, 1, 1]} : vector<8x8x4xf32> to vector<1x8x4xf32>
    %76 = vector.shape_cast %75 : vector<1x8x4xf32> to vector<8x4xf32>
    %77 = tpu.concatenate %62, %64, %66, %68, %70, %72, %74, %76 in 1 : vector<8x4xf32>, vector<8x4xf32>, vector<8x4xf32>, vector<8x4xf32>, vector<8x4xf32>, vector<8x4xf32>, vector<8x4xf32>, vector<8x4xf32> -> vector<8x32xf32>
    %c0_23 = arith.constant 0 : index
    %c0_24 = arith.constant 0 : index
    %78 = vector.load %arg8[%c0_23, %c0_24] : memref<32x32xf32, #tpu.memory_space<vmem>>, vector<32x32xf32>
    %cst_25 = arith.constant dense<0.000000e+00> : vector<8x32xf32>
    %79 = tpu.matmul %77, %78, %cst_25 {dimension_numbers = #tpu.dot_dimension_numbers<[1], [0], [0], [1], [0, 0, 1, 1], [], []>} : vector<8x32xf32>, vector<32x32xf32>, vector<8x32xf32> -> vector<8x32xf32>
    %c0_26 = arith.constant 0 : index
    %c0_27 = arith.constant 0 : index
    %80 = vector.load %arg9[%c0_26, %c0_27] : memref<1x32xf32, #tpu.memory_space<vmem>>, vector<1x32xf32>
    %81 = vector.shape_cast %80 : vector<1x32xf32> to vector<32xf32>
    %82 = vector.shape_cast %81 : vector<32xf32> to vector<1x32xf32>
    %83 = vector.broadcast %82 : vector<1x32xf32> to vector<8x32xf32>
    %84 = arith.addf %79, %83 : vector<8x32xf32>
    %85 = arith.addf %1, %84 : vector<8x32xf32>
    %c0_28 = arith.constant 0 : index
    %c0_29 = arith.constant 0 : index
    %86 = vector.load %arg4[%c0_28, %c0_29] : memref<1x32xf32, #tpu.memory_space<vmem>>, vector<1x32xf32>
    %87 = vector.shape_cast %86 : vector<1x32xf32> to vector<32xf32>
    %c0_30 = arith.constant 0 : index
    %c0_31 = arith.constant 0 : index
    %88 = vector.load %arg5[%c0_30, %c0_31] : memref<1x32xf32, #tpu.memory_space<vmem>>, vector<1x32xf32>
    %89 = vector.shape_cast %88 : vector<1x32xf32> to vector<32xf32>
    %cst_32 = arith.constant dense<0.000000e+00> : vector<8xf32>
    %90 = vector.multi_reduction <add>, %85, %cst_32 [1] : vector<8x32xf32> to vector<8xf32>
    %91 = vector.shape_cast %90 : vector<8xf32> to vector<8x1xf32>
    %cst_33 = arith.constant 3.200000e+01 : f32
    %92 = vector.broadcast %cst_33 : f32 to vector<8x1xf32>
    %93 = arith.divf %91, %92 : vector<8x1xf32>
    %94 = vector.broadcast %93 : vector<8x1xf32> to vector<8x32xf32>
    %95 = arith.subf %85, %94 : vector<8x32xf32>
    %96 = arith.mulf %95, %95 : vector<8x32xf32>
    %cst_34 = arith.constant dense<0.000000e+00> : vector<8xf32>
    %97 = vector.multi_reduction <add>, %96, %cst_34 [1] : vector<8x32xf32> to vector<8xf32>
    %98 = vector.shape_cast %97 : vector<8xf32> to vector<8x1xf32>
    %cst_35 = arith.constant 3.200000e+01 : f32
    %99 = vector.broadcast %cst_35 : f32 to vector<8x1xf32>
    %100 = arith.divf %98, %99 : vector<8x1xf32>
    %cst_36 = arith.constant 9.99999974E-6 : f32
    %101 = vector.broadcast %cst_36 : f32 to vector<8x1xf32>
    %102 = arith.addf %100, %101 : vector<8x1xf32>
    %103 = math.rsqrt %102 : vector<8x1xf32>
    %104 = vector.broadcast %103 : vector<8x1xf32> to vector<8x32xf32>
    %105 = arith.mulf %95, %104 : vector<8x32xf32>
    %106 = vector.shape_cast %87 : vector<32xf32> to vector<1x32xf32>
    %107 = vector.broadcast %106 : vector<1x32xf32> to vector<8x32xf32>
    %108 = arith.mulf %105, %107 : vector<8x32xf32>
    %109 = vector.shape_cast %89 : vector<32xf32> to vector<1x32xf32>
    %110 = vector.broadcast %109 : vector<1x32xf32> to vector<8x32xf32>
    %111 = arith.addf %108, %110 : vector<8x32xf32>
    %c0_37 = arith.constant 0 : index
    %c0_38 = arith.constant 0 : index
    %112 = vector.load %arg10[%c0_37, %c0_38] : memref<32x64xf32, #tpu.memory_space<vmem>>, vector<32x64xf32>
    %cst_39 = arith.constant dense<0.000000e+00> : vector<8x64xf32>
    %113 = tpu.matmul %111, %112, %cst_39 {dimension_numbers = #tpu.dot_dimension_numbers<[1], [0], [0], [1], [0, 0, 1, 1], [], []>} : vector<8x32xf32>, vector<32x64xf32>, vector<8x64xf32> -> vector<8x64xf32>
    %c0_40 = arith.constant 0 : index
    %c0_41 = arith.constant 0 : index
    %114 = vector.load %arg11[%c0_40, %c0_41] : memref<1x64xf32, #tpu.memory_space<vmem>>, vector<1x64xf32>
    %115 = vector.shape_cast %114 : vector<1x64xf32> to vector<64xf32>
    %116 = vector.shape_cast %115 : vector<64xf32> to vector<1x64xf32>
    %117 = vector.broadcast %116 : vector<1x64xf32> to vector<8x64xf32>
    %118 = arith.addf %113, %117 : vector<8x64xf32>
    %cst_42 = arith.constant 5.000000e-01 : f32
    %119 = vector.broadcast %cst_42 : f32 to vector<8x64xf32>
    %120 = arith.mulf %119, %118 : vector<8x64xf32>
    %cst_43 = arith.constant 4.471500e-02 : f32
    %121 = vector.broadcast %cst_43 : f32 to vector<8x64xf32>
    %122 = arith.mulf %121, %118 : vector<8x64xf32>
    %123 = arith.mulf %122, %118 : vector<8x64xf32>
    %124 = arith.mulf %123, %118 : vector<8x64xf32>
    %125 = arith.addf %118, %124 : vector<8x64xf32>
    %cst_44 = arith.constant 0.797884583 : f32
    %126 = vector.broadcast %cst_44 : f32 to vector<8x64xf32>
    %127 = arith.mulf %126, %125 : vector<8x64xf32>
    %128 = math.tanh %127 : vector<8x64xf32>
    %cst_45 = arith.constant 1.000000e+00 : f32
    %129 = vector.broadcast %cst_45 : f32 to vector<8x64xf32>
    %130 = arith.addf %129, %128 : vector<8x64xf32>
    %131 = arith.mulf %120, %130 : vector<8x64xf32>
    %c0_46 = arith.constant 0 : index
    %c0_47 = arith.constant 0 : index
    %132 = vector.load %arg12[%c0_46, %c0_47] : memref<64x32xf32, #tpu.memory_space<vmem>>, vector<64x32xf32>
    %cst_48 = arith.constant dense<0.000000e+00> : vector<8x32xf32>
    %133 = tpu.matmul %131, %132, %cst_48 {dimension_numbers = #tpu.dot_dimension_numbers<[1], [0], [0], [1], [0, 0, 1, 1], [], []>} : vector<8x64xf32>, vector<64x32xf32>, vector<8x32xf32> -> vector<8x32xf32>
    %c0_49 = arith.constant 0 : index
    %c0_50 = arith.constant 0 : index
    %134 = vector.load %arg13[%c0_49, %c0_50] : memref<1x32xf32, #tpu.memory_space<vmem>>, vector<1x32xf32>
    %135 = vector.shape_cast %134 : vector<1x32xf32> to vector<32xf32>
    %136 = vector.shape_cast %135 : vector<32xf32> to vector<1x32xf32>
    %137 = vector.broadcast %136 : vector<1x32xf32> to vector<8x32xf32>
    %138 = arith.addf %133, %137 : vector<8x32xf32>
    %139 = arith.addf %85, %138 : vector<8x32xf32>
    %c0_51 = arith.constant 0 : index
    %c0_52 = arith.constant 0 : index
    %c0_53 = arith.constant 0 : index
    %140 = vector.load %arg14[%c0_51, %c0_52, %c0_53] : memref<1x8x32xf32, #tpu.memory_space<vmem>>, vector<1x8x32xf32>
    %141 = vector.shape_cast %140 : vector<1x8x32xf32> to vector<8x32xf32>
    %142 = vector.shape_cast %139 : vector<8x32xf32> to vector<1x8x32xf32>
    tpu.vector_store %arg14[%c0_51, %c0_52, %c0_53], %142 {strides = array<i32>} : memref<1x8x32xf32, #tpu.memory_space<vmem>>, vector<1x8x32xf32>,
    return
  }
  func.func @transform_0(%arg0: i32) -> (i32, i32, i32) {
    %c0_i32 = arith.constant 0 : i32
    %c0_i32_0 = arith.constant 0 : i32
    %c0_i32_1 = arith.constant 0 : i32
    return %arg0, %c0_i32, %c0_i32_0 : i32, i32, i32
  }
  func.func @transform_1(%arg0: i32) -> (i32, i32) {
    %c0_i32 = arith.constant 0 : i32
    %c0_i32_0 = arith.constant 0 : i32
    %c0_i32_1 = arith.constant 0 : i32
    return %c0_i32, %c0_i32_0 : i32, i32
  }
  func.func @transform_2(%arg0: i32) -> (i32, i32) {
    %c0_i32 = arith.constant 0 : i32
    %c0_i32_0 = arith.constant 0 : i32
    %c0_i32_1 = arith.constant 0 : i32
    return %c0_i32, %c0_i32_0 : i32, i32
  }
  func.func @transform_3(%arg0: i32) -> (i32, i32) {
    %c0_i32 = arith.constant 0 : i32
    %c0_i32_0 = arith.constant 0 : i32
    %c0_i32_1 = arith.constant 0 : i32
    return %c0_i32, %c0_i32_0 : i32, i32
  }
  func.func @transform_4(%arg0: i32) -> (i32, i32) {
    %c0_i32 = arith.constant 0 : i32
    %c0_i32_0 = arith.constant 0 : i32
    %c0_i32_1 = arith.constant 0 : i32
    return %c0_i32, %c0_i32_0 : i32, i32
  }
  func.func @transform_5(%arg0: i32) -> (i32, i32, i32) {
    %c0_i32 = arith.constant 0 : i32
    %c0_i32_0 = arith.constant 0 : i32
    %c0_i32_1 = arith.constant 0 : i32
    %c0_i32_2 = arith.constant 0 : i32
    return %c0_i32, %c0_i32_0, %c0_i32_1 : i32, i32, i32
  }
  func.func @transform_6(%arg0: i32) -> (i32, i32, i32) {
    %c0_i32 = arith.constant 0 : i32
    %c0_i32_0 = arith.constant 0 : i32
    %c0_i32_1 = arith.constant 0 : i32
    %c0_i32_2 = arith.constant 0 : i32
    return %c0_i32, %c0_i32_0, %c0_i32_1 : i32, i32, i32
  }
  func.func @transform_7(%arg0: i32) -> (i32, i32) {
    %c0_i32 = arith.constant 0 : i32
    %c0_i32_0 = arith.constant 0 : i32
    %c0_i32_1 = arith.constant 0 : i32
    return %c0_i32, %c0_i32_0 : i32, i32
  }
  func.func @transform_8(%arg0: i32) -> (i32, i32) {
    %c0_i32 = arith.constant 0 : i32
    %c0_i32_0 = arith.constant 0 : i32
    %c0_i32_1 = arith.constant 0 : i32
    return %c0_i32, %c0_i32_0 : i32, i32
  }
  func.func @transform_9(%arg0: i32) -> (i32, i32) {
    %c0_i32 = arith.constant 0 : i32
    %c0_i32_0 = arith.constant 0 : i32
    %c0_i32_1 = arith.constant 0 : i32
    return %c0_i32, %c0_i32_0 : i32, i32
  }
  func.func @transform_10(%arg0: i32) -> (i32, i32) {
    %c0_i32 = arith.constant 0 : i32
    %c0_i32_0 = arith.constant 0 : i32
    %c0_i32_1 = arith.constant 0 : i32
    return %c0_i32, %c0_i32_0 : i32, i32
  }
  func.func @transform_11(%arg0: i32) -> (i32, i32) {
    %c0_i32 = arith.constant 0 : i32
    %c0_i32_0 = arith.constant 0 : i32
    %c0_i32_1 = arith.constant 0 : i32
    return %c0_i32, %c0_i32_0 : i32, i32
  }
  func.func @transform_12(%arg0: i32) -> (i32, i32) {
    %c0_i32 = arith.constant 0 : i32
    %c0_i32_0 = arith.constant 0 : i32
    %c0_i32_1 = arith.constant 0 : i32
    return %c0_i32, %c0_i32_0 : i32, i32
  }
  func.func @transform_13(%arg0: i32) -> (i32, i32, i32) {
    %c0_i32 = arith.constant 0 : i32
    %c0_i32_0 = arith.constant 0 : i32
    %c0_i32_1 = arith.constant 0 : i32
    return %arg0, %c0_i32, %c0_i32_0 : i32, i32, i32
  }
}

</mosaic_0001>

<bundles_post_ra>
// kernel: tpu_custom_call.1
= control target key start
LH: loop header
LB: loop body
LE: loop exit
PB: predicated region body
PF: predicated region fallthrough
CT: control target
= control target key end

     0   :  { %s4091_s0 = inlined_call_operand.vmem [shape: f32[2,8,32], index: 0, kind: input, shape index: {}]   ;;  %s4092_s1 = inlined_call_operand.vmem [shape: f32[1,32], index: 1, kind: input, shape index: {}]   ;;  %s4093_s2 = inlined_call_operand.vmem [shape: f32[1,32], index: 2, kind: input, shape index: {}]   ;;  %s4094_s3 = inlined_call_operand.vmem [shape: f32[1,32], index: 3, kind: input, shape index: {}]   ;;  %s4095_s4 = inlined_call_operand.vmem [shape: f32[1,32], index: 4, kind: input, shape index: {}]   ;;  %s4096_s5 = inlined_call_operand.vmem [shape: f32[8,32,12], index: 5, kind: input, shape index: {}]   ;;  %s4097_s6 = inlined_call_operand.vmem [shape: f32[8,1,12], index: 6, kind: input, shape index: {}]   ;;  %s4098_s7 = inlined_call_operand.vmem [shape: f32[32,32], index: 7, kind: input, shape index: {}]   ;;  %s4099_s8 = inlined_call_operand.vmem [shape: f32[1,32], index: 8, kind: input, shape index: {}]   ;;  %s4100_s9 = inlined_call_operand.vmem [shape: f32[32,64], index: 9, kind: input, shape index: {}]   ;;  %s4101_s10 = inlined_call_operand.vmem [shape: f32[1,64], index: 10, kind: input, shape index: {}]   ;;  %s4102_s11 = inlined_call_operand.vmem [shape: f32[64,32], index: 11, kind: input, shape index: {}]   ;;  %s4103_s12 = inlined_call_operand.vmem [shape: f32[1,32], index: 12, kind: input, shape index: {}]   ;;  %s4104_s13 = inlined_call_operand.hbm [shape: f32[2,8,32], index: 13, kind: output, shape index: {}]  }
   0x1   :  { %4106 = sst [smem:[#allocation7_spill]] %s4091_s0 }
   0x2   :  { %18 = vsyncpa [#allocation3], 0 }
   0x3   :  { %20 = vsyncpa [#allocation3 + $0x1], 0  ;;  %s3543_s25 = smov 0   ;;  %s3545_s26 = smov 0  }
   0x4   :  { %s3547_s27 = smov 0   ;;  %s3549_s28 = smov 0  }
   0x5 LB: > { %4107 = sst [smem:[#allocation5_spill]] %s3454_s27  ;;  %s3564_s29 = sadd.s32 4294967295, %s3458_s28   ;;  %s3458_s28 = sphi %s3549_s28, %s4118_s28   ;;  %s3454_s27 = sphi %s3547_s27, %s4115_s27   ;;  %s3450_s26 = sphi %s3545_s26, %s4117_s26   ;;  %s3446_s25 = sphi %s3543_s25, %s4116_s25  }
   0x6   : > { %s2875_s30 = sadd.s32 4294967294, %s3458_s28   ;;  %s3568_s14 = sadd.s32 1, %s3458_s28  }
   0x7   : > { %s311_s15 = sadd.s32 1, %s3454_s27  ;;  %s308_s16 = ssub.s32 %s3458_s28, %s3568_s14 }
   0x8   : > { %p321_p0 = scmp.ne.s32.totalorder %s3454_s27, %s3450_s26  ;;  %p309_p1 = scmp.eq.s32.totalorder %s308_s16, 0 }
   0x9   : > { %p322_p2 = scmp.eq.s32.totalorder %s3564_s29, 1  ;;  %p327_p3 = scmp.ne.s32.totalorder %s3450_s26, %s3446_s25 }
   0xa   : > { %p328_p4 = scmp.eq.s32.totalorder %s2875_s30, 1  ;;  %p2878_p7 = scmp.ge.s32.totalorder %s3458_s28, 1 }
   0xb   : > { %s3579_s17 = scalar_select %p309_p1, %s3454_s27, %s311_s15  }
   0xc   : > { %p3581_p5 = por %p322_p2, %p321_p0  ;;  %p3585_p6 = por %p328_p4, %p327_p3 }
   0xd   : > { %4108 = sst [smem:[#allocation6_spill]] %s3579_s17  ;;  %p389_p8 = scmp.lt.s32.totalorder %s3458_s28, 3 }
   0xf   : > { %p390_p9 = pnand %p2878_p7, %p389_p8 }
  0x10   : > { %p432_p10 = scmp.lt.s32.totalorder (!%p390_p9), %s3564_s29, 1  ;;  %vm439_vm0 = vcmask (!%p390_p9), 261120   ;;  %s4111_s0 = sld [smem:[#allocation7_spill]] (!%p390_p9)  ;;  %v468_v7 = vld [vmem:[%s4096_s5] sm:$0xff] (!%p390_p9)  ;;  %v469_v8 = vld [vmem:[%s4096_s5 + $0x8] sm:$0xff] (!%p390_p9)  ;;  %v3460_v12 = vmov (!%p390_p9), 0.0|0.0  }
  0x11   : > { %393 = sbr.rel (%p390_p9) target bundleno = 2559 (0x9ff), region = 72  ;;  %v476_v9 = vld [vmem:[%s4096_s5 + $0x40] sm:$0xff] (!%p390_p9)  ;;  %v3236_v10 = vpack.c.bf16 (!%p390_p9), %v469_v8, %v468_v7  ;;  %v477_v11 = vld [vmem:[%s4096_s5 + $0x48] sm:$0xff] (!%p390_p9)  ;;  %3235 = vmatprep.subr.bf16.mxu1 (!%p390_p9), %v3460_v12  ;;  %3247 = vmatprep.subr.bf16.mxu0 (!%p390_p9), %v3460_v12  ;;  %v470_v14 = vld [vmem:[%s4096_s5 + $0x10] sm:$0xff] (!%p390_p9)  ;;  %vm3461_vm1 = vmmov (!%p390_p9), 0   ;;  %v3462_v20 = vmov (!%p390_p9), 0.0  }
  0x12   : > { %v3248_v13 = vpack.c.bf16 (!%p390_p9), %v477_v11, %v476_v9  ;;  %v471_v15 = vld [vmem:[%s4096_s5 + $0x18] sm:$0xff] (!%p390_p9)  ;;  %v478_v16 = vld [vmem:[%s4096_s5 + $0x50] sm:$0xff] (!%p390_p9)  ;;  %3034 = vmatprep.mubr.msk.f32.mxu1 (!%p390_p9), %vm3461_vm1, %v3462_v20  ;;  %3056 = vmatprep.mubr.msk.f32.mxu0 (!%p390_p9), %vm3461_vm1, %v3462_v20  ;;  %v2881_v25 = vld [vmem:[%s4092_s1] ss:$0 sm:$0xff] (!%p390_p9)  ;;  %s3463_s15 = smov (!%p390_p9), 124   ;;  %vm1130_vm2 = vcmask (!%p390_p9), 31744  }
  0x13   : > { %3237 = vmatpush3.bf16.msra.mxu1 (!%p390_p9), %v3236_v10  ;;  %v3239_v17 = vpack.c.bf16 (!%p390_p9), %v471_v15, %v470_v14  ;;  %v479_v18 = vld [vmem:[%s4096_s5 + $0x58] sm:$0xff] (!%p390_p9)  ;;  %v472_v26 = vld [vmem:[%s4096_s5 + $0x20] sm:$0xff] (!%p390_p9)  ;;  %v473_v28 = vld [vmem:[%s4096_s5 + $0x28] sm:$0xff] (!%p390_p9)  ;;  %vm1767_vm4 = vcmask (!%p390_p9), 64512   ;;  %s3466_s30 = smov (!%p390_p9), 8   ;;  %s3469_s22 = smov (!%p390_p9), 24  }
  0x14   : > { %3249 = vmatpush3.bf16.msra.mxu0 (!%p390_p9), %v3248_v13  ;;  %3238 = vmatprep.subr.bf16.mxu1 (!%p390_p9), %v3460_v12  ;;  %v3251_v19 = vpack.c.bf16 (!%p390_p9), %v479_v18, %v478_v16  ;;  %v484_v29 = vld [vmem:[%s4096_s5 + $0x80] sm:$0xff] (!%p390_p9)  ;;  %v485_v30 = vld [vmem:[%s4096_s5 + $0x88] sm:$0xff] (!%p390_p9)  ;;  %v3242_v33 = vpack.c.bf16 (!%p390_p9), %v473_v28, %v472_v26  ;;  %v474_v35 = vld [vmem:[%s4096_s5 + $0x30] sm:$0xff] (!%p390_p9)  ;;  %s3471_s17 = smov (!%p390_p9), 28   ;;  %vm2494_vm5 = vcmask (!%p390_p9), 97280   ;;  %vm2496_vm6 = vcmask (!%p390_p9), 130048  }
  0x15   : > { %3250 = vmatprep.subr.bf16.mxu0 (!%p390_p9), %v3460_v12  ;;  %v2882_v31 = vld [vmem:[%s4093_s2] ss:$0 sm:$0xff] (!%p390_p9)  ;;  %v3260_v34 = vpack.c.bf16 (!%p390_p9), %v485_v30, %v484_v29  ;;  %v475_v37 = vld [vmem:[%s4096_s5 + $0x38] sm:$0xff] (!%p390_p9)  ;;  %v486_v38 = vld [vmem:[%s4096_s5 + $0x90] sm:$0xff] (!%p390_p9)  ;;  %vm2498_vm7 = vcmask (!%p390_p9), 162816   ;;  %vm2500_vm8 = vcmask (!%p390_p9), 195584  }
  0x16   : > { %v487_v39 = vld [vmem:[%s4096_s5 + $0x98] sm:$0xff] (!%p390_p9)  ;;  %v3245_v40 = vpack.c.bf16 (!%p390_p9), %v475_v37, %v474_v35  ;;  %v480_v42 = vld [vmem:[%s4096_s5 + $0x60] sm:$0xff] (!%p390_p9)  ;;  %v481_v43 = vld [vmem:[%s4096_s5 + $0x68] sm:$0xff] (!%p390_p9)  ;;  %vm2502_vm9 = vcmask (!%p390_p9), 228352   ;;  %vm2726_vm10 = vcmask (!%p390_p9), 523264  }
  0x17   : > { %3240 = vmatpush3.bf16.msra.mxu1 (!%p390_p9), %v3239_v17  ;;  %v3263_v41 = vpack.c.bf16 (!%p390_p9), %v487_v39, %v486_v38  ;;  %v492_v44 = vld [vmem:[%s4096_s5 + $0xc0] sm:$0xff] (!%p390_p9)  ;;  %v493_v45 = vld [vmem:[%s4096_s5 + $0xc8] sm:$0xff] (!%p390_p9)  ;;  %v3254_v46 = vpack.c.bf16 (!%p390_p9), %v481_v43, %v480_v42  ;;  %v482_v48 = vld [vmem:[%s4096_s5 + $0x70] sm:$0xff] (!%p390_p9) }
  0x18   : > { %s433_s20 = scalar_select %p432_p10, %s3564_s29, 1  ;;  %3252 = vmatpush3.bf16.msra.mxu0 %v3251_v19  ;;  %3241 = vmatprep.subr.bf16.mxu1 %v3460_v12  ;;  %v3272_v47 = vpack.c.bf16 %v493_v45, %v492_v44  ;;  %v483_v49 = vld [vmem:[%s4096_s5 + $0x78] sm:$0xff]  ;;  %v494_v50 = vld [vmem:[%s4096_s5 + $0xd0] sm:$0xff]  ;;  %v488_v54 = vld [vmem:[%s4096_s5 + $0xa0] sm:$0xff] }
  0x19   : > { %3259 = vmatprep.subr.bf16.mxu0 %v3460_v12  ;;  %v495_v51 = vld [vmem:[%s4096_s5 + $0xd8] sm:$0xff]  ;;  %v3257_v52 = vpack.c.bf16 %v483_v49, %v482_v48  ;;  %v489_v55 = vld [vmem:[%s4096_s5 + $0xa8] sm:$0xff]  ;;  %v490_v57 = vld [vmem:[%s4096_s5 + $0xb0] sm:$0xff] }
  0x1a   : > { %s2880_s21 = sshll.u32 %s433_s20, 3  ;;  %v3275_v53 = vpack.c.bf16 %v495_v51, %v494_v50  ;;  %v3266_v56 = vpack.c.bf16 %v489_v55, %v488_v54  ;;  %v491_v58 = vld [vmem:[%s4096_s5 + $0xb8] sm:$0xff]  ;;  %v496_v60 = vld [vmem:[%s4096_s5 + $0xe0] sm:$0xff]  ;;  %v497_v61 = vld [vmem:[%s4096_s5 + $0xe8] sm:$0xff] }
  0x1b   : > { %s435_s24 = scalar_lea.vmem %s4111_s0, %s2880_s21  ;;  %v3269_v59 = vpack.c.bf16 %v491_v58, %v490_v57  ;;  %v3278_v62 = vpack.c.bf16 %v497_v61, %v496_v60  ;;  %v498_v63 = vld [vmem:[%s4096_s5 + $0xf0] sm:$0xff]  ;;  %v2884_v11 = vld [vmem:[%s4097_s6 + $0x1] ss:$0 sm:$0xff]  ;;  %v2887_v18 = vld [vmem:[%s4097_s6 + $0x4] ss:$0 sm:$0xff]  ;;  %s3465_s21 = smov 4  }
  0x1c   : > { %v3596_v0 = vld [vmem:[%s435_s24] sm:$0xff]  ;;  %s3470_s0 = smov 20  }
  0x1d   : > { %v440_v1 = vsel %vm439_vm0, %v3596_v0, 0.0  ;;  %v2888_v29 = vld [vmem:[%s4097_s6 + $0x5] ss:$0 sm:$0xff] }
  0x1e   : > { %441 = vadd.xlane.f32.xlu0 %v440_v1  ;;  %v499_v1 = vld [vmem:[%s4096_s5 + $0xf8] sm:$0xff] }
  0xab   : > { %v442_v2 = vpop.xlane.xlu0 %441 }
  0xac   : > { %v444_v3 = vmul.f32 0.03125, %v442_v2  ;;  %v3281_v2 = vpack.c.bf16 %v499_v1, %v498_v63 }
  0xae   : > { %v445_v4 = vsub.f32 %v3596_v0, %v444_v3  ;;  %v2883_v3 = vld [vmem:[%s4097_s6] ss:$0 sm:$0xff] }
  0xb0   : > { %v446_v5 = vmul.f32 %v445_v4, %v445_v4 }
  0xb2   : > { %v447_v6 = vsel %vm439_vm0, %v446_v5, 0.0 }
  0xb3   : > { %448 = vadd.xlane.f32.xlu0 %v447_v6 }
 0x140   : > { %v449_v21 = vpop.xlane.xlu0 %448 }
 0x141   : > { %v450_v22 = vmul.f32 0.03125, %v449_v21  ;;  %v2886_v21 = vld [vmem:[%s4097_s6 + $0x3] ss:$0 sm:$0xff] }
 0x143   : > { %v451_v23 = vadd.f32 1e-05, %v450_v22 }
 0x145   : > { %3358 = vrsqrt.f32 %v451_v23 }
 0x14f   : > { %v3359_v24 = vpop.eup %3358 }
 0x150   : > { %v453_v27 = vmul.f32 %v3359_v24, %v445_v4  ;;  %v2885_v4 = vld [vmem:[%s4097_s6 + $0x2] ss:$0 sm:$0xff] }
 0x152   : > { %v460_v32 = vmul.f32 %v2881_v25, %v453_v27  ;;  %v2889_v27 = vld [vmem:[%s4097_s6 + $0x6] ss:$0 sm:$0xff] }
 0x154   : > { %v3657_v36 = vadd.f32 %v2882_v31, %v460_v32 }
 0x156   : > { %3035 = vmatmul.mubr.msk.f32.vlgmr.msra.gmra.mrb[0].mxu1 %vm439_vm0, %v3657_v36  ;;  %3057 = vmatmul.mubr.msk.f32.vlgmr.msra.gmra.mrb[0].mxu0 %vm439_vm0, %v3657_v36 }
 0x157   : > { %3243 = vmatpush3.bf16.msra.mxu1 %v3242_v33  ;;  %3261 = vmatpush3.bf16.msra.mxu0 %v3260_v34  ;;  %v2890_v33 = vld [vmem:[%s4097_s6 + $0x7] ss:$0 sm:$0xff] }
 0x158   : > { %3244 = vmatprep.subr.bf16.mxu1 %v3460_v12  ;;  %3262 = vmatprep.subr.bf16.mxu0 %v3460_v12 }
 0x159   : > { %3045 = vmatprep.mubr.msk.f32.mxu1 %vm3461_vm1, %v3462_v20  ;;  %3078 = vmatprep.mubr.msk.f32.mxu0 %vm3461_vm1, %v3462_v20 }
 0x15b   : > { %3246 = vmatpush3.bf16.msra.mxu1 %v3245_v40  ;;  %3264 = vmatpush3.bf16.msra.mxu0 %v3263_v41 }
 0x15c   : > { %3253 = vmatprep.subr.bf16.mxu1 %v3460_v12  ;;  %3271 = vmatprep.subr.bf16.mxu0 %v3460_v12 }
 0x15e   : > { %3046 = vmatmul.mubr.msk.f32.vlgmr.msra.gmra.mrb[2].mxu1 %vm439_vm0, %v3657_v36  ;;  %3079 = vmatmul.mubr.msk.f32.vlgmr.msra.gmra.mrb[2].mxu0 %vm439_vm0, %v3657_v36 }
 0x15f   : > { %3255 = vmatpush3.bf16.msra.mxu1 %v3254_v46  ;;  %3273 = vmatpush3.bf16.msra.mxu0 %v3272_v47 }
 0x160   : > { %3256 = vmatprep.subr.bf16.mxu1 %v3460_v12  ;;  %3274 = vmatprep.subr.bf16.mxu0 %v3460_v12 }
 0x161   : > { %3067 = vmatprep.mubr.msk.f32.mxu1 %vm3461_vm1, %v3462_v20  ;;  %3100 = vmatprep.mubr.msk.f32.mxu0 %vm3461_vm1, %v3462_v20 }
 0x163   : > { %3258 = vmatpush3.bf16.msra.mxu1 %v3257_v52  ;;  %3276 = vmatpush3.bf16.msra.mxu0 %v3275_v53  ;;  %v1752_v53 = vlaneseq }
 0x164   : > { %3265 = vmatprep.subr.bf16.mxu1 %v3460_v12  ;;  %3114 = vmatprep.subr.mxu0 %v3462_v20 }
 0x165   : > { %v1753_v54 = vshrl.u32 %v1752_v53, 7  ;;  %v1755_v55 = vand.u32 127, %v1752_v53 }
 0x166   : > { %3068 = vmatmul.mubr.msk.f32.vlgmr.msra.gmra.mrb[4].mxu1 %vm439_vm0, %v3657_v36  ;;  %3101 = vmatmul.mubr.msk.f32.vlgmr.msra.gmra.mrb[4].mxu0 %vm439_vm0, %v3657_v36 }
 0x167   : > { %3267 = vmatpush3.bf16.msra.mxu1 %v3266_v56  ;;  %3089 = vmatprep.mubr.msk.f32.mxu1 %vm3461_vm1, %v3462_v20  ;;  %vm3864_vm3 = vcmp.le.s32.totalorder %v1755_v55, %v1753_v54 }
 0x168   : > { %3268 = vmatprep.subr.bf16.mxu1 %v3460_v12  ;;  %3116 = vmatprep.mubr.msk.f32.mxu0 %vm3461_vm1, %v3462_v20 }
 0x16b   : > { %3270 = vmatpush3.bf16.msra.mxu1 %v3269_v59 }
 0x16c   : > { %3277 = vmatprep.subr.bf16.mxu1 %v3460_v12 }
 0x16e   : > { %3090 = vmatmul.mubr.msk.f32.vlgmr.msra.gmra.mrb[6].mxu1 %vm439_vm0, %v3657_v36 }
 0x16f   : > { %3279 = vmatpush3.bf16.msra.mxu1 %v3278_v62  ;;  %3111 = vmatprep.mubr.msk.f32.mxu1 %vm3461_vm1, %v3462_v20 }
 0x170   : > { %3280 = vmatprep.subr.bf16.mxu1 %v3460_v12 }
 0x173   : > { %3282 = vmatpush3.bf16.msra.mxu1 %v3281_v2 }
 0x174   : > { %3119 = vmatprep.subr.mxu1 %v3462_v20 }
 0x176   : > { %3112 = vmatmul.mubr.msk.f32.vlgmr.msra.gmra.mrb[8].mxu1 %vm439_vm0, %v3657_v36 }
 0x177   : > { %3121 = vmatprep.mubr.msk.f32.mxu1 %vm3461_vm1, %v3462_v20 }
 0x229   : > { %v625_v5 = vpop.f32.mrb[0].mxu1  ;;  %v765_v6 = vpop.f32.mrb[0].mxu0 }
 0x22a   : > { %v3766_v7 = vadd.f32 %v2883_v3, %v625_v5  ;;  %v3768_v8 = vadd.f32 %v2885_v4, %v765_v6  ;;  %v3036_v9 = vpop.f32.mrb[1].mxu1  ;;  %v3058_v10 = vpop.f32.mrb[1].mxu0 }
 0x22c   : > { %1285 = vrot.lane.b32.xlu0 %v3768_v8, %s3463_s15  ;;  %1128 = vrot.lane.b32.xlu1 %v3766_v7, %s3463_s15  ;;  %v1119_v38 = vmul.f32 0.5, %v3766_v7  ;;  %v1121_v40 = vmul.f32 0.5, %v3768_v8 }
 0x231   : > { %v695_v13 = vpop.f32.mrb[2].mxu1  ;;  %v905_v14 = vpop.f32.mrb[2].mxu0 }
 0x232   : > { %v3777_v15 = vadd.f32 %v2884_v11, %v695_v13  ;;  %v3047_v16 = vpop.f32.mrb[3].mxu1  ;;  %v3080_v17 = vpop.f32.mrb[3].mxu0  ;;  %v3784_v19 = vadd.f32 %v2887_v18, %v905_v14 }
 0x234   : > { %1207 = vrot.lane.b32.xlu1 %v3777_v15, %s3463_s15  ;;  %v1120_v42 = vmul.f32 0.5, %v3777_v15  ;;  %v1123_v44 = vmul.f32 0.5, %v3784_v19 }
 0x238   : > { %1441 = vrot.lane.b32.xlu1 %v3784_v19, %s3463_s15 }
 0x239   : > { %v835_v22 = vpop.f32.mrb[4].mxu1  ;;  %v1045_v23 = vpop.f32.mrb[4].mxu0 }
 0x23a   : > { %v3791_v24 = vadd.f32 %v2886_v21, %v835_v22  ;;  %v3069_v25 = vpop.f32.mrb[5].mxu1  ;;  %v3102_v26 = vpop.f32.mrb[5].mxu0  ;;  %v3798_v28 = vadd.f32 %v2889_v27, %v1045_v23 }
 0x23c   : > { %1363 = vrot.lane.b32.xlu1 %v3791_v24, %s3463_s15  ;;  %v1122_v46 = vmul.f32 0.5, %v3791_v24  ;;  %v1125_v48 = vmul.f32 0.5, %v3798_v28 }
 0x240   : > { %1597 = vrot.lane.b32.xlu1 %v3798_v28, %s3463_s15 }
 0x241   : > { %v975_v30 = vpop.f32.mrb[6].mxu1 }
 0x242   : > { %v3805_v31 = vadd.f32 %v2888_v29, %v975_v30  ;;  %v3091_v32 = vpop.f32.mrb[7].mxu1 }
 0x244   : > { %1519 = vrot.lane.b32.xlu1 %v3805_v31, %s3463_s15  ;;  %v1124_v50 = vmul.f32 0.5, %v3805_v31 }
 0x249   : > { %v1115_v34 = vpop.f32.mrb[8].mxu1 }
 0x24a   : > { %v3812_v35 = vadd.f32 %v2890_v33, %v1115_v34  ;;  %v3113_v36 = vpop.f32.mrb[9].mxu1 }
 0x24c   : > { %1675 = vrot.lane.b32.xlu1 %v3812_v35, %s3463_s15  ;;  %v1126_v52 = vmul.f32 0.5, %v3812_v35  ;;  %s3464_s15 = smov 120  }
 0x29e   : > { %v1129_v37 = vpop.permute.xlu1 %1128  ;;  %v1286_v39 = vpop.permute.xlu0 %1285 }
 0x29f   : > { %3115 = vmatpush3.xpose.msk.msra.mxu0 %vm1130_vm2, %v1129_v37 }
 0x2a0   : > { %3124 = vmatprep.subr.mxu0 %v3462_v20 }
 0x2a2   : > { %3117 = vmatmul.mubr.msk.f32.vlgmr.msra.gmra.mrb[6].mxu0 %vm1130_vm2, %v1119_v38 }
 0x2a3   : > { %3125 = vmatpush3.xpose.msk.msra.mxu0 %vm1130_vm2, %v1286_v39  ;;  %3126 = vmatprep.mubr.msk.f32.mxu0 %vm3461_vm1, %v3462_v20 }
 0x2a4   : > { %3134 = vmatprep.subr.mxu0 %v3462_v20 }
 0x2a6   : > { %v1208_v41 = vpop.permute.xlu1 %1207  ;;  %3127 = vmatmul.mubr.msk.f32.vlgmr.msra.gmra.mrb[8].mxu0 %vm1130_vm2, %v1121_v40 }
 0x2a7   : > { %3120 = vmatpush3.xpose.msk.msra.mxu1 %vm1130_vm2, %v1208_v41  ;;  %3136 = vmatprep.mubr.msk.f32.mxu0 %vm3461_vm1, %v3462_v20 }
 0x2a8   : > { %3129 = vmatprep.subr.mxu1 %v3462_v20 }
 0x2aa   : > { %v1442_v43 = vpop.permute.xlu1 %1441  ;;  %3122 = vmatmul.mubr.msk.f32.vlgmr.msra.gmra.mrb[10].mxu1 %vm1130_vm2, %v1120_v42 }
 0x2ab   : > { %3135 = vmatpush3.xpose.msk.msra.mxu0 %vm1130_vm2, %v1442_v43  ;;  %3131 = vmatprep.mubr.msk.f32.mxu1 %vm3461_vm1, %v3462_v20 }
 0x2ac   : > { %3144 = vmatprep.subr.mxu0 %v3462_v20 }
 0x2ae   : > { %3137 = vmatmul.mubr.msk.f32.vlgmr.msra.gmra.mrb[10].mxu0 %vm1130_vm2, %v1123_v44  ;;  %v1364_v45 = vpop.permute.xlu1 %1363 }
 0x2af   : > { %3130 = vmatpush3.xpose.msk.msra.mxu1 %vm1130_vm2, %v1364_v45  ;;  %3146 = vmatprep.mubr.msk.f32.mxu0 %vm3461_vm1, %v3462_v20 }
 0x2b0   : > { %3139 = vmatprep.subr.mxu1 %v3462_v20 }
 0x2b2   : > { %v1598_v47 = vpop.permute.xlu1 %1597  ;;  %3132 = vmatmul.mubr.msk.f32.vlgmr.msra.gmra.mrb[12].mxu1 %vm1130_vm2, %v1122_v46 }
 0x2b3   : > { %3145 = vmatpush3.xpose.msk.msra.mxu0 %vm1130_vm2, %v1598_v47  ;;  %3141 = vmatprep.mubr.msk.f32.mxu1 %vm3461_vm1, %v3462_v20 }
 0x2b4   : > { %3154 = vmatprep.subr.mxu0 %v3462_v20 }
 0x2b6   : > { %3147 = vmatmul.mubr.msk.f32.vlgmr.msra.gmra.mrb[12].mxu0 %vm1130_vm2, %v1125_v48  ;;  %v1520_v49 = vpop.permute.xlu1 %1519 }
 0x2b7   : > { %3140 = vmatpush3.xpose.msk.msra.mxu1 %vm1130_vm2, %v1520_v49  ;;  %3156 = vmatprep.mubr.msk.f32.mxu0 %vm3461_vm1, %v3462_v20 }
 0x2b8   : > { %3149 = vmatprep.subr.mxu1 %v3462_v20 }
 0x2ba   : > { %3142 = vmatmul.mubr.msk.f32.vlgmr.msra.gmra.mrb[14].mxu1 %vm1130_vm2, %v1124_v50 }
 0x2bb   : > { %3151 = vmatprep.mubr.msk.f32.mxu1 %vm3461_vm1, %v3462_v20 }
 0x2be   : > { %v1676_v51 = vpop.permute.xlu1 %1675 }
 0x2bf   : > { %3150 = vmatpush3.xpose.msk.msra.mxu1 %vm1130_vm2, %v1676_v51 }
 0x2c0   : > { %3159 = vmatprep.subr.mxu1 %v3462_v20 }
 0x2c2   : > { %3152 = vmatmul.mubr.msk.f32.vlgmr.msra.gmra.mrb[16].mxu1 %vm1130_vm2, %v1126_v52 }
 0x2c3   : > { %3161 = vmatprep.mubr.msk.f32.mxu1 %vm3461_vm1, %v3462_v20 }
 0x375   : > { %v1202_v57 = vpop.f32.mrb[6].mxu0 }
 0x376   : > { %v1759_v58 = vsel %vm3864_vm3, %v1202_v57, -1e+10  ;;  %v3118_v59 = vpop.f32.mrb[7].mxu0 }
 0x377   : > { %v1768_v60 = vsel %vm1767_vm4, %v1759_v58, -inf }
 0x378   : > { %1769 = vmax.xlane.f32.xlu1 %v1768_v60 }
 0x379   : > { %v1358_v61 = vpop.f32.mrb[8].mxu0 }
 0x37a   : > { %v3128_v62 = vpop.f32.mrb[9].mxu0  ;;  %v1761_v4 = vsel %vm3864_vm3, %v1358_v61, -1e+10 }
 0x37b   : > { %v1774_v9 = vsel %vm1767_vm4, %v1761_v4, -inf }
 0x37d   : > { %v1280_v63 = vpop.f32.mrb[10].mxu1 }
 0x37e   : > { %v1760_v1 = vsel %vm3864_vm3, %v1280_v63, -1e+10  ;;  %v3123_v2 = vpop.f32.mrb[11].mxu1 }
 0x37f   : > { %v1771_v3 = vsel %vm1767_vm4, %v1760_v1, -inf }
 0x380   : > { %1772 = vmax.xlane.f32.xlu0 %v1771_v3 }
 0x381   : > { %v1514_v5 = vpop.f32.mrb[10].mxu0 }
 0x382   : > { %v3138_v6 = vpop.f32.mrb[11].mxu0  ;;  %v1763_v10 = vsel %vm3864_vm3, %v1514_v5, -1e+10 }
 0x383   : > { %v1780_v16 = vsel %vm1767_vm4, %v1763_v10, -inf }
 0x384   : > { %1775 = vmax.xlane.f32.xlu0 %v1774_v9 }
 0x385   : > { %v1436_v11 = vpop.f32.mrb[12].mxu1 }
 0x386   : > { %v1762_v13 = vsel %vm3864_vm3, %v1436_v11, -1e+10  ;;  %v3133_v14 = vpop.f32.mrb[13].mxu1 }
 0x387   : > { %v1777_v17 = vsel %vm1767_vm4, %v1762_v13, -inf }
 0x388   : > { %1781 = vmax.xlane.f32.xlu0 %v1780_v16  ;;  %1778 = vmax.xlane.f32.xlu1 %v1777_v17 }
 0x389   : > { %v1670_v18 = vpop.f32.mrb[12].mxu0 }
 0x38a   : > { %v1765_v21 = vsel %vm3864_vm3, %v1670_v18, -1e+10  ;;  %v3148_v22 = vpop.f32.mrb[13].mxu0 }
 0x38b   : > { %v1786_v23 = vsel %vm1767_vm4, %v1765_v21, -inf }
 0x38c   : > { %1787 = vmax.xlane.f32.xlu0 %v1786_v23 }
 0x38d   : > { %v1592_v25 = vpop.f32.mrb[14].mxu1 }
 0x38e   : > { %v1764_v26 = vsel %vm3864_vm3, %v1592_v25, -1e+10  ;;  %v3143_v27 = vpop.f32.mrb[15].mxu1 }
 0x38f   : > { %v1783_v29 = vsel %vm1767_vm4, %v1764_v26, -inf }
 0x390   : > { %1784 = vmax.xlane.f32.xlu1 %v1783_v29 }
 0x395   : > { %v1748_v30 = vpop.f32.mrb[16].mxu1 }
 0x396   : > { %v1766_v32 = vsel %vm3864_vm3, %v1748_v30, -1e+10  ;;  %v3153_v33 = vpop.f32.mrb[17].mxu1 }
 0x397   : > { %v1789_v34 = vsel %vm1767_vm4, %v1766_v32, -inf }
 0x398   : > { %1790 = vmax.xlane.f32.xlu1 %v1789_v34 }
 0x3a2   : > { %1856 = vrot.lane.b32.xlu0 %v3766_v7, %s3464_s15 }
 0x3a6   : > { %2084 = vrot.lane.b32.xlu0 %v3791_v24, %s3464_s15 }
 0x3a9   : > { %1932 = vrot.lane.b32.xlu1 %v3777_v15, %s3464_s15 }
 0x3aa   : > { %2236 = vrot.lane.b32.xlu0 %v3805_v31, %s3464_s15 }
 0x3ad   : > { %2008 = vrot.lane.b32.xlu1 %v3768_v8, %s3464_s15 }
 0x3b1   : > { %2160 = vrot.lane.b32.xlu1 %v3784_v19, %s3464_s15 }
 0x405   : > { %v1770_v36 = vpop.xlane.xlu1 %1769 }
 0x406   : > { %v1792_v37 = vsub.f32 %v1759_v58, %v1770_v36 }
 0x408   : > { %v1800_v38 = vmul.f32 1.442695, %v1792_v37 }
 0x40a   : > { %3360 = vpow2.f32 %v1800_v38 }
 0x40d   : > { %v1773_v7 = vpop.xlane.xlu0 %1772 }
 0x40e   : > { %v1793_v39 = vsub.f32 %v1760_v1, %v1773_v7 }
 0x410   : > { %v1802_v40 = vmul.f32 1.442695, %v1793_v39 }
 0x411   : > { %v1776_v24 = vpop.xlane.xlu0 %1775 }
 0x412   : > { %3362 = vpow2.f32 %v1802_v40  ;;  %v1794_v41 = vsub.f32 %v1761_v4, %v1776_v24 }
 0x414   : > { %v3904_v15 = vpop.eup %3360  ;;  %v1804_v42 = vmul.f32 1.442695, %v1794_v41 }
 0x415   : > { %v1782_v31 = vpop.xlane.xlu0 %1781  ;;  %v1779_v43 = vpop.xlane.xlu1 %1778  ;;  %v1816_v8 = vsel %vm1767_vm4, %v3904_v15, 0.0 }
 0x416   : > { %3364 = vpow2.f32 %v1804_v42  ;;  %v1796_v19 = vsub.f32 %v1763_v10, %v1782_v31  ;;  %v1795_v44 = vsub.f32 %v1762_v13, %v1779_v43  ;;  %1817 = vadd.xlane.f32.xlu0 %v1816_v8 }
 0x418   : > { %v1808_v45 = vmul.f32 1.442695, %v1796_v19  ;;  %v1806_v46 = vmul.f32 1.442695, %v1795_v44 }
 0x419   : > { %v1788_v47 = vpop.xlane.xlu0 %1787 }
 0x41a   : > { %3366 = vpow2.f32 %v1808_v45  ;;  %v1798_v48 = vsub.f32 %v1765_v21, %v1788_v47  ;;  %v2505_v47 = vld [vmem:[%s4098_s7 + $0x8] sm:$0xff] }
 0x41b   : > { %3368 = vpow2.f32 %v1806_v46  ;;  %v2504_v46 = vld [vmem:[%s4098_s7] sm:$0xff] }
 0x41c   : > { %v3363_v49 = vpop.eup %3362  ;;  %v1812_v50 = vmul.f32 1.442695, %v1798_v48  ;;  %v2506_v48 = vld [vmem:[%s4098_s7 + $0x10] sm:$0xff] }
 0x41d   : > { %v1857_v51 = vpop.permute.xlu0 %1856  ;;  %v1785_v52 = vpop.xlane.xlu1 %1784  ;;  %v1819_v53 = vsel %vm1767_vm4, %v3363_v49, 0.0 }
 0x41e   : > { %3370 = vpow2.f32 %v1812_v50  ;;  %v1797_v54 = vsub.f32 %v1764_v26, %v1785_v52  ;;  %3155 = vmatpush3.msra.mxu0 %v1857_v51  ;;  %1820 = vadd.xlane.f32.xlu1 %v1819_v53  ;;  %v3284_v50 = vpack.c.bf16 %v2505_v47, %v2504_v46  ;;  %v2507_v51 = vld [vmem:[%s4098_s7 + $0x18] sm:$0xff]  ;;  %v2715_v46 = vld [vmem:[%s4102_s11 + $0x20] sm:$0xff]  ;;  %v2716_v47 = vld [vmem:[%s4102_s11 + $0x28] sm:$0xff] }
 0x41f   : > { %3164 = vmatprep.subr.mxu0 %v3462_v20  ;;  %v3287_v52 = vpack.c.bf16 %v2507_v51, %v2506_v48  ;;  %v3302_v48 = vpack.c.bf16 %v2716_v47, %v2715_v46 }
 0x420   : > { %v3365_v55 = vpop.eup %3364  ;;  %v1810_v56 = vmul.f32 1.442695, %v1797_v54 }
 0x421   : > { %v1822_v57 = vsel %vm1767_vm4, %v3365_v55, 0.0  ;;  %v2085_v11 = vpop.permute.xlu0 %2084 }
 0x422   : > { %3372 = vpow2.f32 %v1810_v56  ;;  %1823 = vadd.xlane.f32.xlu0 %v1822_v57 }
 0x424   : > { %v3367_v58 = vpop.eup %3366 }
 0x425   : > { %v3369_v59 = vpop.eup %3368  ;;  %v1791_v60 = vpop.xlane.xlu1 %1790  ;;  %v1828_v61 = vsel %vm1767_vm4, %v3367_v58, 0.0 }
 0x426   : > { %v1799_v62 = vsub.f32 %v1766_v32, %v1791_v60  ;;  %1829 = vadd.xlane.f32.xlu0 %v1828_v61  ;;  %v1825_v63 = vsel %vm1767_vm4, %v3369_v59, 0.0  ;;  %v2237_v13 = vpop.permute.xlu0 %2236 }
 0x427   : > { %1826 = vadd.xlane.f32.xlu1 %v1825_v63 }
 0x428   : > { %v3913_v1 = vpop.eup %3370  ;;  %v1814_v2 = vmul.f32 1.442695, %v1799_v62 }
 0x429   : > { %v1933_v3 = vpop.permute.xlu1 %1932  ;;  %v1834_v4 = vsel %vm1767_vm4, %v3913_v1, 0.0 }
 0x42a   : > { %3374 = vpow2.f32 %v1814_v2  ;;  %1835 = vadd.xlane.f32.xlu0 %v1834_v4  ;;  %3160 = vmatpush3.msra.mxu1 %v1933_v3 }
 0x42b   : > { %3169 = vmatprep.subr.mxu1 %v3462_v20 }
 0x42c   : > { %v3373_v5 = vpop.eup %3372 }
 0x42d   : > { %v1831_v6 = vsel %vm1767_vm4, %v3373_v5, 0.0  ;;  %v2009_v14 = vpop.permute.xlu1 %2008 }
 0x42e   : > { %1832 = vadd.xlane.f32.xlu1 %v1831_v6 }
 0x431   : > { %v2161_v17 = vpop.permute.xlu1 %2160 }
 0x434   : > { %v3919_v9 = vpop.eup %3374 }
 0x435   : > { %v1837_v10 = vsel %vm1767_vm4, %v3919_v9, 0.0 }
 0x436   : > { %1838 = vadd.xlane.f32.xlu1 %v1837_v10 }
 0x440   : > { %2388 = vrot.lane.b32.xlu0 %v3812_v35, %s3464_s15 }
 0x447   : > { %2312 = vrot.lane.b32.xlu1 %v3798_v28, %s3464_s15  ;;  %s3467_s15 = smov 16  }
 0x4a3   : > { %v1818_v16 = vpop.xlane.xlu0 %1817 }
 0x4a4   : > { %3376 = vrcp.f32 %v1818_v16 }
 0x4ab   : > { %v1821_v18 = vpop.xlane.xlu1 %1820 }
 0x4ac   : > { %3378 = vrcp.f32 %v1821_v18  ;;  %v2923_v18 = vld [vmem:[%s4099_s8] ss:$0 sm:$0xff] }
 0x4ae   : > { %v3377_v21 = vpop.eup %3376 }
 0x4af   : > { %v1848_v22 = vmul.f32 %v3377_v21, %v3904_v15  ;;  %v1824_v23 = vpop.xlane.xlu0 %1823 }
 0x4b0   : > { %3380 = vrcp.f32 %v1824_v23 }
 0x4b1   : > { %3157 = vmatmul.mubr.msk.f32.vlgmr.msra.gmra.mrb[14].mxu0 %vm1767_vm4, %v1848_v22 }
 0x4b2   : > { %3165 = vmatpush3.msra.mxu0 %v2009_v14  ;;  %3166 = vmatprep.mubr.msk.f32.mxu0 %vm3461_vm1, %v3462_v20 }
 0x4b3   : > { %v1830_v28 = vpop.xlane.xlu0 %1829  ;;  %3174 = vmatprep.subr.mxu0 %v3462_v20 }
 0x4b4   : > { %3382 = vrcp.f32 %v1830_v28  ;;  %v1827_v35 = vpop.xlane.xlu1 %1826 }
 0x4b5   : > { %3384 = vrcp.f32 %v1827_v35 }
 0x4b6   : > { %v3379_v25 = vpop.eup %3378 }
 0x4b7   : > { %v1849_v26 = vmul.f32 %v3379_v25, %v3363_v49  ;;  %v1836_v27 = vpop.xlane.xlu0 %1835 }
 0x4b8   : > { %3386 = vrcp.f32 %v1836_v27 }
 0x4b9   : > { %3162 = vmatmul.mubr.msk.f32.vlgmr.msra.gmra.mrb[18].mxu1 %vm1767_vm4, %v1849_v26 }
 0x4ba   : > { %v3381_v29 = vpop.eup %3380  ;;  %3170 = vmatpush3.msra.mxu1 %v2085_v11  ;;  %3171 = vmatprep.mubr.msk.f32.mxu1 %vm3461_vm1, %v3462_v20 }
 0x4bb   : > { %v1850_v30 = vmul.f32 %v3381_v29, %v3365_v55  ;;  %v1833_v32 = vpop.xlane.xlu1 %1832  ;;  %3179 = vmatprep.subr.mxu1 %v3462_v20  ;;  %v2389_v15 = vpop.permute.xlu0 %2388 }
 0x4bc   : > { %3388 = vrcp.f32 %v1833_v32 }
 0x4bd   : > { %3167 = vmatmul.mubr.msk.f32.vlgmr.msra.gmra.mrb[16].mxu0 %vm1767_vm4, %v1850_v30  ;;  %v2618_v30 = vld [vmem:[%s4100_s9] sm:$0xff] }
 0x4be   : > { %v3383_v33 = vpop.eup %3382  ;;  %3175 = vmatpush3.msra.mxu0 %v2161_v17  ;;  %3176 = vmatprep.mubr.msk.f32.mxu0 %vm3461_vm1, %v3462_v20 }
 0x4bf   : > { %v3385_v34 = vpop.eup %3384  ;;  %v1852_v36 = vmul.f32 %v3383_v33, %v3367_v58  ;;  %3184 = vmatprep.subr.mxu0 %v3462_v20  ;;  %v2620_v33 = vld [vmem:[%s4100_s9 + $0x10] sm:$0xff] }
 0x4c0   : > { %v1851_v37 = vmul.f32 %v3385_v34, %v3369_v59  ;;  %v2621_v34 = vld [vmem:[%s4100_s9 + $0x18] sm:$0xff] }
 0x4c1   : > { %3177 = vmatmul.mubr.msk.f32.vlgmr.msra.gmra.mrb[18].mxu0 %vm1767_vm4, %v1852_v36  ;;  %v3293_v36 = vpack.c.bf16 %v2621_v34, %v2620_v33 }
 0x4c2   : > { %3172 = vmatmul.mubr.msk.f32.vlgmr.msra.gmra.mrb[20].mxu1 %vm1767_vm4, %v1851_v37  ;;  %3186 = vmatprep.mubr.msk.f32.mxu0 %vm3461_vm1, %v3462_v20  ;;  %v3387_v7 = vpop.eup %3386 }
 0x4c3   : > { %3180 = vmatpush3.msra.mxu1 %v2237_v13  ;;  %v1839_v38 = vpop.xlane.xlu1 %1838  ;;  %3181 = vmatprep.mubr.msk.f32.mxu1 %vm3461_vm1, %v3462_v20  ;;  %v1854_v40 = vmul.f32 %v3387_v7, %v3913_v1 }
 0x4c4   : > { %3390 = vrcp.f32 %v1839_v38  ;;  %3189 = vmatprep.subr.mxu1 %v3462_v20 }
 0x4c6   : > { %v3389_v39 = vpop.eup %3388 }
 0x4c7   : > { %v1853_v24 = vmul.f32 %v3389_v39, %v3373_v5  ;;  %v2313_v41 = vpop.permute.xlu1 %2312 }
 0x4c8   : > { %3185 = vmatpush3.msra.mxu0 %v2313_v41  ;;  %v2926_v41 = vld [vmem:[%s4095_s4] ss:$0 sm:$0xff] }
 0x4c9   : > { %3182 = vmatmul.mubr.msk.f32.vlgmr.msra.gmra.mrb[22].mxu1 %vm1767_vm4, %v1853_v24  ;;  %3187 = vmatmul.mubr.msk.f32.vlgmr.msra.gmra.mrb[20].mxu0 %vm1767_vm4, %v1854_v40  ;;  %v2925_v40 = vld [vmem:[%s4094_s3] ss:$0 sm:$0xff] }
 0x4ca   : > { %3190 = vmatpush3.msra.mxu1 %v2389_v15  ;;  %3191 = vmatprep.mubr.msk.f32.mxu1 %vm3461_vm1, %v3462_v20 }
 0x4cb   : > { %3283 = vmatprep.subr.bf16.mxu0 %v3460_v12  ;;  %3202 = vmatprep.mubr.msk.f32.mxu0 %vm3461_vm1, %v3462_v20 }
 0x4cc   : > { %3289 = vmatprep.subr.bf16.mxu1 %v3460_v12  ;;  %3285 = vmatpush3.bf16.msra.mxu0 %v3284_v50  ;;  %v2718_v50 = vld [vmem:[%s4102_s11 + $0x38] sm:$0xff] }
 0x4cd   : > { %3286 = vmatprep.subr.bf16.mxu0 %v3460_v12 }
 0x4ce   : > { %v3391_v42 = vpop.eup %3390 }
 0x4cf   : > { %v1855_v31 = vmul.f32 %v3391_v42, %v3919_v9 }
 0x4d0   : > { %3288 = vmatpush3.bf16.msra.mxu0 %v3287_v52  ;;  %v2927_v52 = vld [vmem:[%s4101_s10] ss:$0 sm:$0xff] }
 0x4d1   : > { %3192 = vmatmul.mubr.msk.f32.vlgmr.msra.gmra.mrb[24].mxu1 %vm1767_vm4, %v1855_v31  ;;  %3295 = vmatprep.subr.bf16.mxu0 %v3460_v12  ;;  %v2711_v31 = vld [vmem:[%s4102_s11] sm:$0xff] }
 0x4d2   : > { %3213 = vmatprep.mubr.msk.f32.mxu1 %vm3461_vm1, %v3462_v20 }
 0x584   : > { %v1928_v43 = vpop.f32.mrb[14].mxu0 }
 0x585   : > { %v3158_v8 = vpop.f32.mrb[15].mxu0 }
 0x58c   : > { %v2004_v19 = vpop.f32.mrb[18].mxu1 }
 0x58d   : > { %2465 = vrot.lane.b32.xlu1 %v2004_v19, %s3465_s21  ;;  %v3163_v44 = vpop.f32.mrb[19].mxu1  ;;  %s3468_s21 = smov 12   ;;  %v2713_v19 = vld [vmem:[%s4102_s11 + $0x10] sm:$0xff] }
 0x58e   : > { %v2714_v44 = vld [vmem:[%s4102_s11 + $0x18] sm:$0xff] }
 0x590   : > { %v2080_v45 = vpop.f32.mrb[16].mxu0 }
 0x591   : > { %2469 = vrot.lane.b32.xlu0 %v2080_v45, %s3466_s30  ;;  %v3168_v49 = vpop.f32.mrb[17].mxu0  ;;  %v3299_v45 = vpack.c.bf16 %v2714_v44, %v2713_v19  ;;  %s2932_s30 = sshll.u32 %s3564_s29, 7 }
 0x592   : > { %v2717_v49 = vld [vmem:[%s4102_s11 + $0x30] sm:$0xff] }
 0x593   : > { %v3305_v51 = vpack.c.bf16 %v2718_v50, %v2717_v49 }
 0x594   : > { %v2232_v53 = vpop.f32.mrb[18].mxu0 }
 0x595   : > { %v2156_v54 = vpop.f32.mrb[20].mxu1  ;;  %2477 = vrot.lane.b32.xlu0 %v2232_v53, %s3467_s15  ;;  %v3178_v55 = vpop.f32.mrb[19].mxu0 }
 0x596   : > { %2473 = vrot.lane.b32.xlu1 %v2156_v54, %s3468_s21  ;;  %v3173_v56 = vpop.f32.mrb[21].mxu1 }
 0x59c   : > { %v2308_v57 = vpop.f32.mrb[22].mxu1  ;;  %v2384_v58 = vpop.f32.mrb[20].mxu0 }
 0x59d   : > { %2485 = vrot.lane.b32.xlu0 %v2384_v58, %s3469_s22  ;;  %v3188_v59 = vpop.f32.mrb[21].mxu0  ;;  %2481 = vrot.lane.b32.xlu1 %v2308_v57, %s3470_s0  ;;  %v3183_v60 = vpop.f32.mrb[23].mxu1  ;;  %s4048_s22 = scalar_lea.hbm %s4104_s13, %s2932_s30 }
 0x5a4   : > { %v2460_v61 = vpop.f32.mrb[24].mxu1 }
 0x5a5   : > { %2489 = vrot.lane.b32.xlu1 %v2460_v61, %s3471_s17  ;;  %v3193_v62 = vpop.f32.mrb[25].mxu1  ;;  %s429_s17 = sand.u32 1, %s3450_s26  }
 0x5a6   : > { %s2879_s27 = sshll.u32 %s429_s17, 3  ;;  %s2803_s0 = scalar_lea.sflag [#allocation3], %s429_s17 }
 0x5a7   : > { %s431_s16 = scalar_lea.vmem [#allocation2], %s2879_s27  ;;  %s3472_s27 = smov [#allocation2]  }
 0x5a8   : > { %s2816_s20 = sshll.u32 %s431_s16, 4  ;;  %s3400_s23 = sshll.u32 %s3472_s27, 4  ;;  %s4050_s20 = int_to_ptr.vmem [resolvable:$true] %s2816_s20  ;;  %s3401_s23 = int_to_ptr.vmem [resolvable:$false] %s3400_s23 }
 0x5a9   : > { %s3396_s29 = scalar_lea.vmem %s4050_s20, 128  ;;  %s3402_s24 = scalar_lea.vmem %s3401_s23, 256 }
 0x5aa   : > { %p3397_p11 = scmp.ne.s32.totalorder %s4050_s20, %s3396_s29  ;;  %p3403_p0 = scmp.lt.s32.totalorder %s4050_s20, %s3401_s23 }
 0x5ab   : > { %p3404_p1 = scmp.lt.s32.totalorder %s3402_s24, %s3396_s29 }
 0x5ac   : > { %p3398_p12 = pnand %p3397_p11, %p3581_p5 }
 0x5ad   : > { %p3405_p2 = por %p3404_p1, %p3403_p0 }
 0x5ae   : > { %p3399_p13 = pneg %p3398_p12 }
 0x5b0   : > { %p3406_p3 = pnand %p3405_p2, %p3399_p13 }
 0x5ff   : > { %v2466_v63 = vpop.permute.xlu1 %2465 }
 0x600   : > { %v2492_v3 = vsel %vm1130_vm2, %v1928_v43, %v2466_v63  ;;  %v2712_v43 = vld [vmem:[%s4102_s11 + $0x8] sm:$0xff] }
 0x601   : > { %v3296_v8 = vpack.c.bf16 %v2712_v43, %v2711_v31 }
 0x603   : > { %v2470_v1 = vpop.permute.xlu0 %2469 }
 0x604   : > { %v2493_v4 = vsel %vm1767_vm4, %v2492_v3, %v2470_v1  ;;  %v2929_v1 = vld [vmem:[%s4103_s12] ss:$0 sm:$0xff] }
 0x607   : > { %v2478_v5 = vpop.permute.xlu0 %2477 }
 0x608   : > { %v2474_v2 = vpop.permute.xlu1 %2473 }
 0x609   : > { %v2495_v6 = vsel %vm2494_vm5, %v2493_v4, %v2474_v2 }
 0x60a   : > { %v2497_v10 = vsel %vm2496_vm6, %v2495_v6, %v2478_v5 }
 0x60f   : > { %v2482_v9 = vpop.permute.xlu1 %2481  ;;  %v2486_v11 = vpop.permute.xlu0 %2485 }
 0x610   : > { %v2499_v13 = vsel %vm2498_vm7, %v2497_v10, %v2482_v9 }
 0x611   : > { %v2501_v14 = vsel %vm2500_vm8, %v2499_v13, %v2486_v11 }
 0x617   : > { %v2490_v16 = vpop.permute.xlu1 %2489 }
 0x618   : > { %v2503_v17 = vsel %vm2502_vm9, %v2501_v14, %v2490_v16 }
 0x619   : > { %3203 = vmatmul.mubr.msk.f32.vlgmr.msra.gmra.mrb[22].mxu0 %vm439_vm0, %v2503_v17 }
 0x61a   : > { %3232 = vmatprep.mubr.msk.f32.mxu0 %vm3461_vm1, %v3462_v20  ;;  %3297 = vmatpush3.bf16.msra.mxu0 %v3296_v8 }
 0x61b   : > { %3298 = vmatprep.subr.bf16.mxu0 %v3460_v12 }
 0x61e   : > { %3300 = vmatpush3.bf16.msra.mxu0 %v3299_v45 }
 0x61f   : > { %3301 = vmatprep.subr.bf16.mxu0 %v3460_v12 }
 0x622   : > { %3303 = vmatpush3.bf16.msra.mxu0 %v3302_v48 }
 0x623   : > { %3304 = vmatprep.subr.bf16.mxu0 %v3460_v12 }
 0x626   : > { %3306 = vmatpush3.bf16.msra.mxu0 %v3305_v51 }
 0x6ec   : > { %v2584_v21 = vpop.f32.mrb[22].mxu0 }
 0x6ed   : > { %v2585_v22 = vadd.f32 %v2923_v18, %v2584_v21  ;;  %v3204_v23 = vpop.f32.mrb[23].mxu0 }
 0x6ef   : > { %v3983_v28 = vadd.f32 %v2585_v22, %v3596_v0  ;;  %v2619_v0 = vld [vmem:[%s4100_s9 + $0x8] sm:$0xff] }
 0x6f0   : > { %v3290_v32 = vpack.c.bf16 %v2619_v0, %v2618_v30 }
 0x6f1   : > { %v2591_v35 = vsel %vm439_vm0, %v3983_v28, 0.0 }
 0x6f2   : > { %2592 = vadd.xlane.f32.xlu0 %v2591_v35  ;;  %3291 = vmatpush3.bf16.msra.mxu1 %v3290_v32 }
 0x6f3   : > { %3292 = vmatprep.subr.bf16.mxu1 %v3460_v12 }
 0x6f6   : > { %3294 = vmatpush3.bf16.msra.mxu1 %v3293_v36 }
 0x77f   : > { %v2593_v25 = vpop.xlane.xlu0 %2592 }
 0x780   : > { %v2594_v26 = vmul.f32 0.03125, %v2593_v25 }
 0x782   : > { %v2595_v27 = vsub.f32 %v3983_v28, %v2594_v26 }
 0x784   : > { %v2596_v29 = vmul.f32 %v2595_v27, %v2595_v27 }
 0x786   : > { %v2597_v20 = vsel %vm439_vm0, %v2596_v29, 0.0 }
 0x787   : > { %2598 = vadd.xlane.f32.xlu1 %v2597_v20 }
 0x814   : > { %v2599_v37 = vpop.xlane.xlu1 %2598 }
 0x815   : > { %v2600_v38 = vmul.f32 0.03125, %v2599_v37 }
 0x817   : > { %v2601_v7 = vadd.f32 1e-05, %v2600_v38 }
 0x819   : > { %3392 = vrsqrt.f32 %v2601_v7 }
 0x823   : > { %v3393_v39 = vpop.eup %3392 }
 0x824   : > { %v2603_v24 = vmul.f32 %v3393_v39, %v2595_v27 }
 0x826   : > { %v2610_v15 = vmul.f32 %v2925_v40, %v2603_v24 }
 0x828   : > { %v2617_v42 = vadd.f32 %v2926_v41, %v2610_v15 }
 0x82a   : > { %3214 = vmatmul.mubr.msk.f32.vlgmr.msra.gmra.mrb[26].mxu1 %vm439_vm0, %v2617_v42 }
 0x8fd   : > { %v2698_v53 = vpop.f32.mrb[26].mxu1 }
 0x8fe   : > { %v2699_v54 = vadd.f32 %v2927_v52, %v2698_v53  ;;  %v3215_v55 = vpop.f32.mrb[27].mxu1 }
 0x900   : > { %v2703_v56 = vmul.f32 0.044715, %v2699_v54  ;;  %v2702_v62 = vmul.f32 0.5, %v2699_v54 }
 0x902   : > { %v2704_v57 = vmul.f32 %v2703_v56, %v2699_v54 }
 0x904   : > { %v2705_v58 = vmul.f32 %v2704_v57, %v2699_v54 }
 0x906   : > { %v2706_v59 = vadd.f32 %v2705_v58, %v2699_v54 }
 0x908   : > { %v2707_v60 = vmul.f32 0.7978846, %v2706_v59 }
 0x90a   : > { %3394 = vtanh.f32 %v2707_v60 }
 0x914   : > { %v3395_v61 = vpop.eup %3394 }
 0x915   : > { %v2709_v63 = vadd.f32 1.0, %v3395_v61 }
 0x917   : > { %v2710_v12 = vmul.f32 %v2709_v63, %v2702_v62 }
 0x919   : > { %3233 = vmatmul.mubr.msk.f32.vlgmr.msra.gmra.mrb[24].mxu0 %vm2726_vm10, %v2710_v12 }
 0x9ec   : > { %v2796_v2 = vpop.f32.mrb[24].mxu0 }
 0x9ed   : > { %v2797_v3 = vadd.f32 %v2929_v1, %v2796_v2  ;;  %v3234_v4 = vpop.f32.mrb[25].mxu0 }
 0x9ef   : > { %v2800_v5 = vadd.f32 %v2797_v3, %v3983_v28 }
 0x9f1   : > { %2801 = vst.msk [vmem:[%s431_s16] sm:$0xff] %vm439_vm0, %v2800_v5 }
 0x9f2   : > { %3409 = shalt.err (!%p3406_p3)
}
 0x9f3   : > { %s3410_s17 = scalar_lea.hbm %s4048_s22, 128  ;;  %s3414_s15 = scalar_lea.hbm %s4104_s13, 256 }
 0x9f4   : > { %p3411_p4 = scmp.ne.s32.totalorder %s4048_s22, %s3410_s17  ;;  %p3415_p9 = scmp.lt.u32.totalorder %s4048_s22, %s4104_s13 }
 0x9f5   : > { %p3416_p10 = scmp.lt.u32.totalorder %s3414_s15, %s3410_s17  ;;  %p3418_p12 = scmp.lt.u32.totalorder %s3410_s17, %s4048_s22 }
 0x9f6   : > { %p3412_p7 = pnand %p3411_p4, %p3581_p5 }
 0x9f7   : > { %p3417_p11 = por %p3416_p10, %p3415_p9 }
 0x9f8   : > { %p3413_p8 = pneg %p3412_p7 }
 0x9f9   : > { %p3419_p13 = por %p3418_p12, %p3417_p11 }
 0x9fb   : > { %p3420_p0 = pnand %p3419_p13, %p3413_p8 }
 0x9fd   : > { %3423 = shalt.err (!%p3420_p0)
}
 0x9fe   : > { %3307 = dma.vmem_to_hbm [thread:$0]  (%p3581_p5), %s4050_s20, 128, %s4048_s22, %s2803_s0  }
 0x9ff PF: > { %p3313_p1 = scmp.ge.s32.totalorder %s3458_s28, 2  ;;  %s2828_s29 = sand.u32 1, %s3446_s25  }
 0xa00   : > { %s2829_s23 = scalar_lea.sflag [#allocation3], %s2828_s29 }
 0xa01   : > { %p3310_p2 = pnand %p3313_p1, %p3585_p6 }
 0xa03   : > { %3441 = dma.done.wait (!%p3310_p2), %s2829_s23, 128  }
 0xa04   : > { %3443 = vsyncadd (!%p3310_p2), %s2829_s23, 4294967168  ;;  %s4114_s24 = sld [smem:[#allocation5_spill]]  ;;  %s4115_s27 = sld [smem:[#allocation6_spill]] }
 0xa05   : > { %p23_p3 = scmp.ge.s32.totalorder %s3568_s14, 4   ;;  %s4116_s25 = smov %s3450_s26 }
 0xa06   : > { %s4118_s28 = smov %s3568_s14 }
 0xa07   :  { %25 = sbr.rel (!%p23_p3) target bundleno = 5 (0x5), region = 107 }
 0xa0a   : > { %s4117_s26 = smov %s4114_s24 }
 0xa0e   :  { %2834 = vsyncpa [#allocation3], 1 }
 0xa0f   :  { %2836 = vsyncpa [#allocation3 + $0x1], 1 }

</bundles_post_ra>
